<compile_context>
chip_gen: v7x
topology: tpu7x:2x2x1
jax: 0.10.0
libtpu: 0.0.40
codegen_flags: <defaults>
</compile_context>

<pallas_src>
import functools

import jax
import jax.numpy as jnp
from jax import lax
from jax.experimental import pallas as pl
from jax.experimental.pallas import tpu as pltpu


def _round_up(x, m):
    return ((x + m - 1) // m) * m


def _largest_aligned_divisor(total, unit, target):
    """Largest d <= max(target, unit) with d % unit == 0 and total % d == 0, else None."""
    d = min(total, max(target, unit))
    d -= d % unit
    while d >= unit:
        if total % d == 0:
            return d
        d -= unit
    return None


def _binning_kernel(x_ref, b_ref, o_ref, *scratch, bin_size, m_out_tile, n_full, rag):
    """Pool one (m_tile, w_tile) input block into an (m_out_tile, nw_block) output block.

    Row pooling : VPU strided-sublane sum over `bin_size` offsets (stride = bin_size).
    Col pooling : per-128-lane-group MXU matmul against one shared block-diagonal slab
                  b_ref (128*bin, 128) that also carries the 1/bin^2 mean scale.  The
                  ragged tail group (rag < 128 output lanes) uses a prefix of the slab.
    """
    if scratch:                       # Non-f32 input: single in-kernel upcast to a VMEM
        tmp_ref = scratch[0]          # scratch, so HBM traffic stays in the narrow dtype.
        tmp_ref[...] = x_ref[...].astype(jnp.float32)
        src = tmp_ref
    else:
        src = x_ref

    stride = bin_size if bin_size > 1 else None

    def pool_group(lo_out, width_out):
        lo_in = lo_out * bin_size
        width_in = width_out * bin_size
        # Strided-sublane row sum restricted to this group's (128-aligned) lane window.
        rows = src[pl.ds(0, m_out_tile, stride=stride), pl.ds(lo_in, width_in)]
        for r in range(1, bin_size):
            rows = rows + src[pl.ds(r, m_out_tile, stride=stride), pl.ds(lo_in, width_in)]
        # Column pooling: small MXU matmul; full groups use the whole slab, the ragged
        # group uses its top-left prefix (same block-diagonal mapping).
        o_ref[:, pl.ds(lo_out, width_out)] = jnp.dot(
            rows,
            b_ref[pl.ds(0, width_in), pl.ds(0, width_out)],
            preferred_element_type=jnp.float32,
            precision=lax.Precision.HIGHEST,
        )

    for g in range(n_full):
        pool_group(g * 128, 128)
    if rag:
        pool_group(n_full * 128, rag)


def binning_transform(img, bin_size, *, block_bytes=8 << 20):
    """Pallas equivalent of BinningTransform.forward: (C, H, W) -> (C, H//b, W//b) f32."""
    img = jnp.asarray(img)
    C, H, W = img.shape
    if H % bin_size or W % bin_size:
        # torch's .view() would raise for non-divisible shapes; keep the same contract.
        raise ValueError("H and W must be divisible by bin_size")
    new_H, new_W = H // bin_size, W // bin_size

    in_dtype = img.dtype
    cast_in_kernel = in_dtype != jnp.float32
    itemsize = jnp.dtype(in_dtype).itemsize
    # Packed dtypes want the input sublane tile to be a multiple of 8*(4/itemsize).
    row_unit = max(8, 32 // itemsize)

    # Fold channels into rows (free row-major reshape); pooling groups never cross a
    # channel boundary because H % bin_size == 0.
    x2 = img.reshape(C * H, W)
    m_out_total = C * new_H

    # ---- lane (W) tiling ----------------------------------------------------------
    # Keep the whole width in one block whenever a minimal-height stripe fits the
    # budget (virtually always) -> lane block equals the full array dim, so there are
    # no partial blocks, no output padding and no wrapper-side slice.  Only absurdly
    # wide images fall back to 128-aligned lane blocks (masked last block).
    min_stripe_bytes = row_unit * bin_size * W * 4
    if min_stripe_bytes <= block_bytes:
        nw_block, w_tile, grid_w = new_W, W, 1
    else:
        max_nw = max(128, (block_bytes // (4 * bin_size * row_unit * bin_size) // 128) * 128)
        nw_block = min(_round_up(new_W, 128), max_nw)
        w_tile = nw_block * bin_size
        grid_w = pl.cdiv(new_W, nw_block)
    n_full, rag = nw_block // 128, nw_block % 128

    # Shared block-diagonal column-pooling slab: b[i, j] = 1/bin^2 iff j == i // bin.
    col = jnp.arange(128 * bin_size)[:, None] // bin_size
    b_small = (col == jnp.arange(128)[None, :]).astype(jnp.float32)
    b_small = b_small / float(bin_size * bin_size)

    # ---- row (sublane) tiling -----------------------------------------------------
    target_m_out = max(row_unit, min(2048, block_bytes // (4 * bin_size * w_tile)))
    m_out_tile = _largest_aligned_divisor(m_out_total, row_unit, target_m_out)
    if m_out_tile is None:
        m_out_tile = m_out_total                    # block == full dim (tiny images)
    grid_m = pl.cdiv(m_out_total, m_out_tile)
    # v7x megacore: guarantee >= 2 parallel blocks so both TensorCores get work.
    if grid_m * grid_w < 2 and m_out_tile % (2 * row_unit) == 0:
        m_out_tile //= 2
        grid_m = pl.cdiv(m_out_total, m_out_tile)
    m_tile = m_out_tile * bin_size

    # ---- VMEM accounting & compiler params -----------------------------------------
    in_tile_bytes = m_tile * w_tile * itemsize
    out_tile_bytes = m_out_tile * nw_block * 4
    b_bytes = (128 * bin_size) * 128 * 4
    scratch_bytes = m_tile * w_tile * 4 if cast_in_kernel else 0
    needed = 2 * in_tile_bytes + 2 * out_tile_bytes + 2 * b_bytes + scratch_bytes + (2 << 20)
    vmem_limit = max(32 << 20, needed)
    try:  # Cap by the actual part's VMEM (64 MiB on v7x vs 128 MiB on v5e/v6e).
        cap = int(pltpu.get_tpu_info().vmem_capacity_bytes)
        vmem_limit = min(vmem_limit, max(32 << 20, (cap * 5) // 8))
    except Exception:
        vmem_limit = min(vmem_limit, 96 << 20)

    scratch_shapes = []
    if cast_in_kernel:
        scratch_shapes.append(pltpu.VMEM((m_tile, w_tile), jnp.float32))

    grid_spec = pltpu.PrefetchScalarGridSpec(
        num_scalar_prefetch=0,
        grid=(grid_m, grid_w),
        in_specs=[
            pl.BlockSpec((m_tile, w_tile), lambda i, j: (i, j)),       # image rows
            pl.BlockSpec((128 * bin_size, 128), lambda i, j: (0, 0)),  # shared pooling slab
        ],
        out_specs=pl.BlockSpec((m_out_tile, nw_block), lambda i, j: (i, j)),
        scratch_shapes=tuple(scratch_shapes),
    )

    out2 = pl.pallas_call(
        functools.partial(
            _binning_kernel,
            bin_size=bin_size,
            m_out_tile=m_out_tile,
            n_full=n_full,
            rag=rag,
        ),
        out_shape=jax.ShapeDtypeStruct((m_out_total, new_W), jnp.float32),
        grid_spec=grid_spec,
        compiler_params=pltpu.CompilerParams(
            dimension_semantics=("parallel", "parallel"),
            vmem_limit_bytes=int(vmem_limit),
        ),
    )(x2, b_small)

    return out2.reshape(C, new_H, new_W)


def _reference(img, bin_size):
    C, H, W = img.shape
    x = jnp.asarray(img).astype(jnp.float32)
    return x.reshape(C, H // bin_size, bin_size, W // bin_size, bin_size).mean(axis=(2, 4))


if __name__ == "__main__":
    key = jax.random.PRNGKey(0)

    # Primary test matches the toy spec (C=4, H=W=16, bin=2).  Extra configs exercise:
    # lane-aligned new_W, bin=4, a ragged (non-128-multiple) lane group, and the
    # in-kernel upcast path for a narrow input dtype.
    configs = [
        (4, 16, 16, 2, jnp.float32),    # toy: single ragged group, 2 parallel row blocks
        (2, 64, 256, 2, jnp.float32),   # new_W = 128: one full lane group
        (3, 32, 32, 4, jnp.float32),    # bin = 4: 4-way strided row sum
        (1, 48, 384, 2, jnp.float32),   # new_W = 192: one full group + ragged tail group
        (2, 64, 256, 2, jnp.bfloat16),  # narrow dtype stays in HBM; upcast in-kernel
    ]
    for C, H, W, bin_size, dtype in configs:
        key, sub = jax.random.split(key)
        img = jax.random.normal(sub, (C, H, W), dtype=jnp.float32).astype(dtype)

        out = jax.block_until_ready(binning_transform(img, bin_size))
        ref = _reference(img, bin_size)

        assert out.shape == (C, H // bin_size, W // bin_size), (out.shape, (C, H, W, bin_size))
        assert out.dtype == jnp.float32
        tol = 1e-5 if dtype == jnp.float32 else 1e-3
        assert jnp.allclose(out, ref, atol=tol, rtol=tol), (C, H, W, bin_size, dtype)

    print("KERNEL_OK")
</pallas_src>

<mosaic_0001>
module attributes {stable_mosaic.version = 11 : i64} {
  func.func @_binning_kernel(%arg0: i32, %arg1: i32, %arg2: memref<32x16xf32, #tpu.memory_space<vmem>>, %arg3: memref<256x128xf32, #tpu.memory_space<vmem>>, %arg4: memref<16x8xf32, #tpu.memory_space<vmem>>) attributes {dimension_semantics = [#tpu.dimension_semantics<parallel>, #tpu.dimension_semantics<parallel>], iteration_bounds = array<i64: 2, 1>, scalar_prefetch = 0 : i64, scratch_operands = 0 : i64, tpu.core_type = #tpu.core_type<tc>, window_params = [{transform_indices = @transform_0, window_bounds = array<i64: 32, 16>}, {pipeline_mode = #tpu.pipeline_mode<synchronous>, transform_indices = @transform_1, window_bounds = array<i64: 256, 128>}, {transform_indices = @transform_2, window_bounds = array<i64: 16, 8>}]} {
    %c0 = arith.constant 0 : index
    %c0_0 = arith.constant 0 : index
    %0 = tpu.strided_load %arg2[%c0, %c0_0] {strides = array<i32: 2, 1>} : memref<32x16xf32, #tpu.memory_space<vmem>>, vector<16x16xf32>
    %c1 = arith.constant 1 : index
    %c0_1 = arith.constant 0 : index
    %1 = tpu.strided_load %arg2[%c1, %c0_1] {strides = array<i32: 2, 1>} : memref<32x16xf32, #tpu.memory_space<vmem>>, vector<16x16xf32>
    %2 = arith.addf %0, %1 : vector<16x16xf32>
    %c0_2 = arith.constant 0 : index
    %c0_3 = arith.constant 0 : index
    %3 = vector.load %arg3[%c0_2, %c0_3] : memref<256x128xf32, #tpu.memory_space<vmem>>, vector<16x8xf32>
    %cst = arith.constant dense<0.000000e+00> : vector<16x8xf32>
    %4 = tpu.matmul %2, %3, %cst {dimension_numbers = #tpu.dot_dimension_numbers<[1], [0], [0], [1], [0, 0, 1, 1], [], []>, precision = #tpu.contract_precision<fp32>} : vector<16x16xf32>, vector<16x8xf32>, vector<16x8xf32> -> vector<16x8xf32>
    %c0_4 = arith.constant 0 : index
    %c0_5 = arith.constant 0 : index
    %5 = vector.load %arg4[%c0_4, %c0_5] : memref<16x8xf32, #tpu.memory_space<vmem>>, vector<16x8xf32>
    tpu.vector_store %arg4[%c0_4, %c0_5], %4 {strides = array<i32>} : memref<16x8xf32, #tpu.memory_space<vmem>>, vector<16x8xf32>,
    return
  }
  func.func @transform_0(%arg0: i32, %arg1: i32) -> (i32, i32) {
    %c0_i32 = arith.constant 0 : i32
    return %arg0, %arg1 : i32, i32
  }
  func.func @transform_1(%arg0: i32, %arg1: i32) -> (i32, i32) {
    %c0_i32 = arith.constant 0 : i32
    %c0_i32_0 = arith.constant 0 : i32
    %c0_i32_1 = arith.constant 0 : i32
    return %c0_i32, %c0_i32_0 : i32, i32
  }
  func.func @transform_2(%arg0: i32, %arg1: i32) -> (i32, i32) {
    %c0_i32 = arith.constant 0 : i32
    return %arg0, %arg1 : i32, i32
  }
}

</mosaic_0001>

<bundles_post_ra>
// kernel: tpu_custom_call.1
= control target key start
LH: loop header
LB: loop body
LE: loop exit
PB: predicated region body
PF: predicated region fallthrough
CT: control target
= control target key end

     0   :  { %7 = vsyncpa [#allocation3], 0  ;;  %s1033_s9 = smov 0   ;;  %s1035_s10 = smov 0   ;;  %s1109_s0 = inlined_call_operand.vmem [shape: f32[64,16], index: 0, kind: input, shape index: {}]   ;;  %s1110_s1 = inlined_call_operand.hbm [shape: f32[256,128], index: 1, kind: input, shape index: {}]   ;;  %s1111_s2 = inlined_call_operand.vmem [shape: f32[32,8], index: 2, kind: output, shape index: {}]  }
   0x1   :  { %s1037_s11 = smov 0  }
   0x2 LB: > { %s806_s12 = sadd.s32 4294967295, %s1013_s11   ;;  %s25_s13 = sadd.s32 1, %s1009_s10  ;;  %s1013_s11 = sphi %s1037_s11, %s13_s11   ;;  %s1009_s10 = sphi %s1035_s10, %s1121_s10   ;;  %s1005_s9 = sphi %s1033_s9, %s1120_s9  }
   0x3   : > { %p27_p0 = scmp.ge.s32.totalorder %s25_s13, 2  ;;  %p808_p1 = scmp.ge.s32.totalorder %s1013_s11, 1 }
   0x4   : > { %p107_p2 = scmp.lt.s32.totalorder %s1013_s11, 3  ;;  %p1058_p4 = scmp.eq.s32.totalorder %s806_s12, 0 }
   0x5   : > { %s1123_s13 = smov (%p27_p0, %s25_s13), 0  ;;  %s1015_s16 = smov [#allocation2]  }
   0x6   : > { %p1054_p3 = pnand %p808_p1, %p107_p2  ;;  %s119_s17 = sshll.u32 %s1015_s16, 4  ;;  %s120_s17 = int_to_ptr.vmem [resolvable:$true] %s119_s17 }
   0x7   : > { %s1116_s15 = scalar_select %p1058_p4, 1, 0 }
   0x8   : > { %s1115_s14 = scalar_select %p1054_p3, 1, 0 }
   0x9   : > { %p926_p5 = pneg %p1054_p3  ;;  %s959_s21 = scalar_lea.hbm %s1110_s1, 4096 }
   0xa   : > { %p960_p7 = scmp.ne.s32.totalorder %s1110_s1, %s959_s21  ;;  %p966_p11 = scmp.lt.u32.totalorder %s959_s21, %s1110_s1 }
   0xb   : > { %p1066_p6 = pnand %p1058_p4, %p926_p5 }
   0xd   : > { %p961_p8 = pneg %p1066_p6 }
   0xf   : > { %p962_p9 = pnand %p961_p8, %p960_p7 }
  0x11   : > { %p963_p10 = pneg %p962_p9 }
  0x13   : > { %p968_p12 = pnand %p966_p11, %p963_p10 }
  0x15   : > { %971 = shalt.err (!%p968_p12)
}
  0x16   : > { %s972_s26 = scalar_lea.vmem %s120_s17, 4096  ;;  %p980_p2 = scmp.lt.s32.totalorder %s120_s17, %s120_s17 }
  0x17   : > { %p973_p13 = scmp.ne.s32.totalorder %s120_s17, %s972_s26  ;;  %p981_p5 = scmp.lt.s32.totalorder %s972_s26, %s972_s26 }
  0x19   : > { %p975_p0 = pnand %p973_p13, %p961_p8  ;;  %p982_p4 = por %p981_p5, %p980_p2 }
  0x1b   : > { %p976_p1 = pneg %p975_p0 }
  0x1d   : > { %p983_p3 = pnand %p982_p4, %p976_p1 }
  0x1f   : > { %986 = shalt.err (!%p983_p3)
}
  0x20   : > { %s1016_s27 = smov 128   ;;  %s1017_s28 = smov 8  }
  0x21   : > { %929 = dma.hbm_to_vmem [thread:$0]  (!%p1066_p6), %s1110_s1, 4096, %s120_s17, [#allocation3], %s1016_s27, %s1016_s27, %s1017_s28  }
  0x22   : > { %p1118_p7 = scmp.ne.s32.totalorder %s1115_s14, 0 }
  0x23   : > { %p1119_p9 = scmp.ne.s32.totalorder (!%p1118_p7), %s1116_s15, 0 }
  0x24   : > { %147 = sbr.rel (%p1118_p7) target bundleno = 297 (0x129), region = 28 }
  0x2b   : > { %1000 = dma.done.wait (%p1119_p9), [#allocation3], 4096  }
  0x2c   : > { %1002 = vsyncadd (%p1119_p9), [#allocation3], 4294963200  ;;  %s813_s3 = sshll.u32 %s1005_s9, 2  ;;  %v202_v0 = vld [vmem:[#allocation2] sm:$0xff]  ;;  %v203_v1 = vld [vmem:[#allocation2 + $0x8] sm:$0xff]  ;;  %vm204_vm0 = vcmask 130048  }
  0x2d   : > { %p176_p3 = scmp.lt.s32.totalorder %s813_s3, 7  ;;  %v212_v3 = vand.u32 4294901760, %v202_v0  ;;  %v215_v4 = vand.u32 4294901760, %v203_v1  ;;  %s815_s8 = sshll.u32 %s1005_s9, 1  ;;  %vm713_vm1 = vcmask 64512  }
  0x2e   : > { %p185_p4 = scmp.lt.s32.totalorder %s815_s8, 3 }
  0x2f   : > { %s1125_s3 = smov (!%p176_p3, %s813_s3), 7  ;;  %v888_v9 = vpack.c.bf16 %v215_v4, %v212_v3  ;;  %v300_v11 = vsub.f32 %v202_v0, %v212_v3  ;;  %v307_v12 = vsub.f32 %v203_v1, %v215_v4 }
  0x30   : > { %s814_s4 = sshll.u32 %s1125_s3, 3  ;;  %s1127_s8 = smov (!%p185_p4, %s815_s8), 3 }
  0x31   : > { %s182_s7 = scalar_lea.vmem %s1109_s0, %s814_s4  ;;  %901 = vmatprep.subr.bf16.mxu0 %v888_v9  ;;  %889 = vmatprep.subr.bf16.mxu1 %v888_v9  ;;  %v301_v16 = vand.u32 4294901760, %v300_v11  ;;  %v308_v17 = vand.u32 4294901760, %v307_v12  ;;  %v896_v33 = vpack.c.bf16 %v307_v12, %v300_v11  ;;  %s816_s12 = sshll.u32 %s1127_s8, 3 }
  0x32   : > { %v193_v2 = vld [vmem:[%s182_s7] ss:$2 sm:$0xff]  ;;  %v817_v5 = vld [vmem:[%s182_s7 + $0x10] ss:$2 sm:$0xff]  ;;  %v818_v6 = vld [vmem:[%s182_s7 + $0x1] ss:$2 sm:$0xff]  ;;  %903 = vmatpush3.bf16.msra.mxu0 %v888_v9  ;;  %891 = vmatpush3.bf16.msra.mxu1 %v888_v9  ;;  %s191_s16 = scalar_lea.vmem %s1111_s2, %s816_s12 }
  0x33   : > { %v819_v7 = vld [vmem:[%s182_s7 + $0x11] ss:$2 sm:$0xff]  ;;  %v200_v8 = vadd.f32 %v818_v6, %v193_v2  ;;  %v302_v20 = vsub.f32 %v300_v11, %v301_v16  ;;  %v309_v21 = vsub.f32 %v307_v12, %v308_v17  ;;  %v904_v22 = vpack.c.bf16 %v308_v17, %v301_v16 }
  0x34   : > { %v201_v10 = vadd.f32 %v819_v7, %v817_v5 }
  0x35   : > { %v206_v13 = vsel %vm204_vm0, %v200_v8, 0  ;;  %v303_v25 = vand.u32 4294901760, %v302_v20  ;;  %v310_v26 = vand.u32 4294901760, %v309_v21  ;;  %905 = vmatprep.subr.bf16.mxu0 %v904_v22 }
  0x36   : > { %v209_v14 = vsel %vm204_vm0, %v201_v10, 0  ;;  %v278_v15 = vand.u32 4294901760, %v206_v13 }
  0x37   : > { %v288_v18 = vand.u32 4294901760, %v209_v14  ;;  %v892_v29 = vpack.c.bf16 %v310_v26, %v303_v25 }
  0x38   : > { %v279_v19 = vsub.f32 %v206_v13, %v278_v15 }
  0x39   : > { %v289_v23 = vsub.f32 %v209_v14, %v288_v18  ;;  %893 = vmatprep.subr.bf16.mxu1 %v892_v29 }
  0x3a   : > { %v280_v24 = vand.u32 4294901760, %v279_v19 }
  0x3b   : > { %v290_v27 = vand.u32 4294901760, %v289_v23 }
  0x3c   : > { %871 = vmatprep.mubr.f32.mxu0 %v280_v24  ;;  %v281_v28 = vsub.f32 %v279_v19, %v280_v24 }
  0x3d   : > { %872 = vmatmul.mubr.f32.vlgmr.msra.gmra.mrb[0].mxu0 %v290_v27  ;;  %v291_v30 = vsub.f32 %v289_v23, %v290_v27 }
  0x3e   : > { %v282_v31 = vand.u32 4294901760, %v281_v28  ;;  %907 = vmatpush3.bf16.msra.mxu0 %v904_v22  ;;  %878 = vmatprep.mubr.f32.mxu0 %v278_v15 }
  0x3f   : > { %v292_v32 = vand.u32 4294901760, %v291_v30  ;;  %909 = vmatprep.subr.bf16.mxu0 %v888_v9 }
  0x40   : > { %850 = vmatprep.mubr.f32.mxu1 %v282_v31 }
  0x41   : > { %851 = vmatmul.mubr.f32.vlgmr.msra.gmra.mrb[0].mxu1 %v292_v32 }
  0x42   : > { %895 = vmatpush3.bf16.msra.mxu1 %v892_v29  ;;  %857 = vmatprep.mubr.f32.mxu1 %v278_v15 }
  0x43   : > { %897 = vmatprep.subr.bf16.mxu1 %v896_v33 }
  0x45   : > { %879 = vmatmul.mubr.f32.vlgmr.msra.gmra.mrb[0].mxu0 %v288_v18 }
  0x46   : > { %911 = vmatpush3.bf16.msra.mxu0 %v888_v9  ;;  %885 = vmatprep.mubr.f32.mxu0 %v278_v15 }
  0x49   : > { %858 = vmatmul.mubr.f32.vlgmr.msra.gmra.mrb[0].mxu1 %v288_v18 }
  0x4a   : > { %899 = vmatpush3.bf16.msra.mxu1 %v896_v33  ;;  %864 = vmatprep.mubr.f32.mxu1 %v279_v19 }
  0x4d   : > { %886 = vmatmul.mubr.f32.vlgmr.msra.gmra.mrb[0].mxu0 %v288_v18 }
  0x51   : > { %865 = vmatmul.mubr.f32.vlgmr.msra.gmra.mrb[0].mxu1 %v289_v23 }
 0x120   : > { %v887_v34 = vpop.f32.mrb[0].mxu0 }
 0x121   : > { %v703_v35 = vpop.f32.mrb[1].mxu0 }
 0x124   : > { %v866_v36 = vpop.f32.mrb[0].mxu1 }
 0x125   : > { %v912_v37 = vadd.f32 %v887_v34, %v866_v36  ;;  %v457_v38 = vpop.f32.mrb[1].mxu1 }
 0x126   : > { %v913_v39 = vadd.f32 %v703_v35, %v457_v38 }
 0x127   : > { %715 = vst.msk [vmem:[%s191_s16 + $0x8] sm:$0xff] %vm713_vm1, %v912_v37 }
 0x128   : > { %714 = vst.msk [vmem:[%s191_s16] sm:$0xff] %vm713_vm1, %v913_v39 }
 0x129 PF: > { %s13_s11 = sadd.s32 1, %s1013_s11   ;;  %s1120_s9 = smov %s1009_s10 }
 0x12a   : > { %p10_p6 = scmp.ge.s32.totalorder %s13_s11, 4   ;;  %s1121_s10 = smov %s1123_s13 }
 0x12c   :  { %12 = sbr.rel (!%p10_p6) target bundleno = 2 (0x2), region = 66 }
 0x133   :  { %744 = vsyncpa [#allocation3], 1 }
 0x134   :  { %746 = vsyncpa [#allocation3 + $0x1], 1 }

</bundles_post_ra>
